<compile_context>
chip_gen: v6e
topology: v6e:2x2x1
jax: 0.10.0
libtpu: 0.0.40
codegen_flags: <defaults>
</compile_context>

<pallas_src>
import math

import jax
import jax.numpy as jnp
from jax.experimental import pallas as pl
from jax.experimental.pallas import tpu as pltpu

_LANE = 128
_TARGET_TILE_BYTES = 4 * 1024 * 1024      # ~4 MiB tiles -> ~16 MiB pipeline footprint
_SINGLE_BLOCK_MAX_BYTES = 4 * 1024 * 1024  # unaligned small arrays: one full-extent block
_SPLIT_THRESHOLD_BYTES = 4 * 1024 * 1024   # above this, force grid >= 2 (v7x: 2 TCs)
_VMEM_LIMIT_BYTES = 32 * 1024 * 1024       # safe on every generation (v7x scoped = 32 MiB)


def _round_up(n, m):
    return ((n + m - 1) // m) * m


def _identity_copy_kernel(x_ref, o_ref):
    # Straight copy of the current VMEM tile.
    o_ref[...] = x_ref[...]


def _pallas_copy_2d(x2d):
    """Tiled, lane-dense HBM copy of a 2D array via a pipelined Pallas kernel."""
    rows, cols = x2d.shape
    itemsize = jnp.dtype(x2d.dtype).itemsize
    # Packed sublane height: 8 for 32-bit, 16 for 16-bit, 32 for 8-bit dtypes.
    sublane = max(8, 32 // itemsize)
    nbytes = rows * cols * itemsize

    # ~4 MiB row-blocks, aligned to the dtype's packed sublane height.
    block_rows = max(
        sublane,
        (_TARGET_TILE_BYTES // (cols * itemsize)) // sublane * sublane,
    )
    if rows <= block_rows:
        if nbytes > _SPLIT_THRESHOLD_BYTES and rows >= 2 * sublane:
            # Keep at least 2 parallel grid steps so both v7x TensorCores
            # drive their own DMA streams into the shared HBM link.
            block_rows = max(sublane, _round_up((rows + 1) // 2, sublane))
        else:
            # Small input: one full-extent block (full-dim exemption from the
            # (8, 128) tiling rule).
            block_rows = rows
    grid = (pl.cdiv(rows, block_rows),)

    return pl.pallas_call(
        _identity_copy_kernel,
        out_shape=jax.ShapeDtypeStruct((rows, cols), x2d.dtype),
        grid_spec=pltpu.PrefetchScalarGridSpec(
            num_scalar_prefetch=0,
            grid=grid,
            in_specs=[pl.BlockSpec((block_rows, cols), lambda i: (i, 0))],
            out_specs=pl.BlockSpec((block_rows, cols), lambda i: (i, 0)),
        ),
        compiler_params=pltpu.CompilerParams(
            dimension_semantics=("parallel",),
            vmem_limit_bytes=_VMEM_LIMIT_BYTES,
        ),
        # Pure copy: 1 read + 1 write of the tensor, zero flops.
        cost_estimate=pl.CostEstimate(
            flops=0, transcendentals=0, bytes_accessed=2 * nbytes
        ),
    )(x2d)


def dummy_copy(x):
    """Materialize an explicit copy of x using the Pallas copy kernel."""
    orig_shape = x.shape
    dtype = x.dtype
    total = math.prod(orig_shape)
    if total == 0:
        return x

    itemsize = jnp.dtype(dtype).itemsize
    flat = x.reshape(total)

    if total % _LANE == 0:
        # Lane-dense 2D view: widest column count in {1024, 512, 256, 128}
        # that divides the element count -> unmasked full-width vst's, no pad.
        cols = _LANE
        for c in (8 * _LANE, 4 * _LANE, 2 * _LANE):
            if total % c == 0:
                cols = c
                break
        out2d = _pallas_copy_2d(flat.reshape(total // cols, cols))
        return out2d.reshape(orig_shape)

    if total * itemsize <= _SINGLE_BLOCK_MAX_BYTES:
        # Unaligned but small: a single full-extent block (no padding, no
        # slicing, no extra HBM traffic).
        out2d = _pallas_copy_2d(flat.reshape(1, total))
        return out2d.reshape(orig_shape)

    # Rare large-unaligned fallback: copy the 128-aligned prefix with the
    # tiled kernel and attach the (<128-element) tail. Cheaper than the old
    # pad/slice path (~2x vs ~3x HBM traffic on the prefix).
    aligned = (total // _LANE) * _LANE
    prefix = _pallas_copy_2d(flat[:aligned].reshape(aligned // _LANE, _LANE))
    out_flat = jnp.concatenate([prefix.reshape(aligned), flat[aligned:]])
    return out_flat.reshape(orig_shape)


def dummy_forward(x):
    """Identity forward pass (Dummy module).

    Dummy has zero required data movement, so the optimal kernel is no kernel:
    return x untouched (0 bytes of HBM traffic on v5e/v6e/v7x alike). Use
    `dummy_copy(x)` when a physically distinct output buffer is required.
    """
    return x


class DummyPallas:
    """Mirror of the PyTorch Dummy module: stores out_size, forward is identity."""

    def __init__(self, size):
        self.out_size = size  # no parameters to initialize

    def __call__(self, x):
        return dummy_forward(x)


if __name__ == "__main__":
    key = jax.random.PRNGKey(0)
    # NCHW-style input consistent with a typical policy-network feature map.
    x = jax.random.normal(key, (2, 4, 16, 16), dtype=jnp.float32)

    # 1) Module forward: zero-copy identity (the actual Dummy semantics).
    module = DummyPallas(size=4 * 16 * 16)
    y = jax.block_until_ready(module(x))
    assert y.shape == x.shape and y.dtype == x.dtype
    assert bool(jnp.all(y == x)), "identity mismatch"

    # 2) Pallas copy kernel: 128-aligned path (2048 elems -> 2 x 1024 view).
    y_copy = jax.block_until_ready(dummy_copy(x))
    assert y_copy.shape == x.shape and y_copy.dtype == x.dtype
    assert bool(jnp.all(y_copy == x)), "pallas copy mismatch (aligned path)"

    # 3) Pallas copy kernel: odd-sized, non-128-aligned input (single-block path).
    x_odd = jax.random.normal(jax.random.PRNGKey(0), (3, 5, 7), dtype=jnp.float32)
    y_odd = jax.block_until_ready(dummy_copy(x_odd))
    assert y_odd.shape == x_odd.shape and bool(jnp.all(y_odd == x_odd))

    # 4) Pallas copy kernel: bf16 aligned input (16-bit sublane packing path).
    x_bf16 = jax.random.normal(jax.random.PRNGKey(1), (4, 8, 32, 32), dtype=jnp.bfloat16)
    y_bf16 = jax.block_until_ready(dummy_copy(x_bf16))
    assert y_bf16.shape == x_bf16.shape and bool(jnp.all(y_bf16 == x_bf16))

    print("KERNEL_OK")
</pallas_src>

<mosaic_0001>
module attributes {stable_mosaic.version = 11 : i64} {
  func.func @_identity_copy_kernel(%arg0: i32, %arg1: memref<2x1024xf32, #tpu.memory_space<vmem>>, %arg2: memref<2x1024xf32, #tpu.memory_space<vmem>>) attributes {dimension_semantics = [#tpu.dimension_semantics<parallel>], iteration_bounds = array<i64: 1>, scalar_prefetch = 0 : i64, scratch_operands = 0 : i64, tpu.core_type = #tpu.core_type<tc>, window_params = [{transform_indices = @transform_0, window_bounds = array<i64: 2, 1024>}, {transform_indices = @transform_1, window_bounds = array<i64: 2, 1024>}]} {
    %c0 = arith.constant 0 : index
    %c0_0 = arith.constant 0 : index
    %0 = vector.load %arg1[%c0, %c0_0] : memref<2x1024xf32, #tpu.memory_space<vmem>>, vector<2x1024xf32>
    %c0_1 = arith.constant 0 : index
    %c0_2 = arith.constant 0 : index
    %1 = vector.load %arg2[%c0_1, %c0_2] : memref<2x1024xf32, #tpu.memory_space<vmem>>, vector<2x1024xf32>
    tpu.vector_store %arg2[%c0_1, %c0_2], %0 {strides = array<i32>} : memref<2x1024xf32, #tpu.memory_space<vmem>>, vector<2x1024xf32>,
    return
  }
  func.func @transform_0(%arg0: i32) -> (i32, i32) {
    %c0_i32 = arith.constant 0 : i32
    %c0_i32_0 = arith.constant 0 : i32
    return %arg0, %c0_i32 : i32, i32
  }
  func.func @transform_1(%arg0: i32) -> (i32, i32) {
    %c0_i32 = arith.constant 0 : i32
    %c0_i32_0 = arith.constant 0 : i32
    return %arg0, %c0_i32 : i32, i32
  }
}

</mosaic_0001>

<bundles_post_ra>
// kernel: tpu_custom_call.1
= control target key start
LH: loop header
LB: loop body
LE: loop exit
PB: predicated region body
PF: predicated region fallthrough
CT: control target
= control target key end

     0   :  { %6 = vsyncpa [#allocation3], 0  ;;  %s104_s0 = inlined_call_operand.hbm [shape: f32[2,1024], index: 0, kind: input, shape index: {}]   ;;  %s105_s1 = inlined_call_operand.hbm [shape: f32[2,1024], index: 1, kind: output, shape index: {}]  }
   0x1   :  { %7 = vsyncpa [#allocation4], 0  ;;  %s86_s6 = smov [#allocation2]  }
   0x2   :  { %s14_s7 = sshll.u32 %s86_s6, 4  ;;  %s15_s7 = int_to_ptr.vmem [resolvable:$true] %s14_s7 }
   0x3   :  { %s50_s8 = scalar_lea.vmem %s15_s7, 256  ;;  %p55_p1 = scmp.lt.s32.totalorder %s15_s7, %s15_s7 }
   0x4   :  { %p51_p0 = scmp.ne.s32.totalorder %s15_s7, %s50_s8  ;;  %p56_p2 = scmp.lt.s32.totalorder %s50_s8, %s50_s8 }
   0x6   :  { %p57_p3 = por %p56_p2, %p55_p1 }
   0x8   :  { %p58_p4 = pnand %p57_p3, %p51_p0 }
   0xa   :  { %61 = shalt.err (!%p58_p4)
}
   0xb   :  { %17 = dma.hbm_to_vmem [thread:$0]  %s104_s0, 256, %s15_s7, [#allocation3]  }
   0xc   :  { %82 = dma.done.wait [#allocation3], 256  }
   0xd   :  { %83 = vsyncadd [#allocation3], 4294967040  ;;  %s87_s11 = smov [#allocation5]   ;;  %v21_v0 = vld [vmem:[#allocation2] sm:$0xff]  ;;  %v22_v1 = vld [vmem:[#allocation2 + $0x8] sm:$0xff] }
   0xe   :  { %s31_s12 = sshll.u32 %s87_s11, 4  ;;  %23 = vst [vmem:[#allocation5] sm:$0xff] %v21_v0  ;;  %24 = vst [vmem:[#allocation5 + $0x8] sm:$0xff] %v22_v1  ;;  %s32_s12 = int_to_ptr.vmem [resolvable:$true] %s31_s12 }
   0xf   :  { %s62_s13 = scalar_lea.vmem %s32_s12, 256  ;;  %p67_p6 = scmp.lt.s32.totalorder %s32_s12, %s32_s12 }
  0x10   :  { %p63_p5 = scmp.ne.s32.totalorder %s32_s12, %s62_s13  ;;  %p68_p7 = scmp.lt.s32.totalorder %s62_s13, %s62_s13 }
  0x12   :  { %p69_p8 = por %p68_p7, %p67_p6 }
  0x14   :  { %p70_p9 = pnand %p69_p8, %p63_p5 }
  0x16   :  { %73 = shalt.err (!%p70_p9)
}
  0x17   :  { %34 = dma.vmem_to_hbm [thread:$0]  %s32_s12, 256, %s105_s1, [#allocation4]  }
  0x18   :  { %84 = dma.done.wait [#allocation4], 256  }
  0x19   :  { %85 = vsyncadd [#allocation4], 4294967040 }
  0x1a   :  { %38 = vsyncpa [#allocation3], 1 }
  0x1b   :  { %39 = vsyncpa [#allocation4], 1 }

</bundles_post_ra>
